<compile_context>
chip_gen: v6e
topology: v6e:2x2x1
jax: 0.10.0
libtpu: 0.0.40
codegen_flags: <defaults>
</compile_context>

<pallas_src>
import functools
import math

import jax
import jax.numpy as jnp
from jax import lax
from jax.experimental import pallas as pl
from jax.experimental.pallas import tpu as pltpu


def _round_up(v, m):
    return (v + m - 1) // m * m


def _pad(a, shape):
    if tuple(a.shape) == tuple(shape):
        return a
    return jnp.pad(a, [(0, s - d) for d, s in zip(a.shape, shape)])


def _divisor_tile(n_p, target, cap):
    """Largest 128-multiple divisor of n_p that is <= target.  If only 128
    qualifies (and the caller wanted >= 256), fall back to the smallest
    divisor above target that still fits the VMEM cap."""
    target = max(128, target)
    best_small, best_large = 128, None
    d = 128
    while d <= n_p:
        if n_p % d == 0:
            if d <= target:
                best_small = d
            elif best_large is None and d <= cap:
                best_large = d
        d += 128
    if best_small >= min(256, target) or best_large is None:
        return best_small
    return best_large


def _gcn_kernel(feat_ref, adj_ref, w_ref, b_ref, out_ref, acc_ref, *,
                apply_w, adj_kn_layout, x_resident, tk):
    """One (batch, row-tile, k-tile) grid step.

    feat_ref: (1, F, N_p) resident features per batch   (x_resident=True)
              (1, F, TK)  k-chunk of features           (x_resident=False)
              F = Fin (apply_w) or Fout (support^T pre-computed outside).
    adj_ref : (1, TM, TK) adjacency tile (natural layout), or
              (1, TK, TM) pre-transposed tile (symmetric_adj fast path).
    w_ref   : (Fout, Fin) resident W^T in fp32 (used only when apply_w).
    b_ref   : (Fout, 1)   resident bias, fp32.
    out_ref : (1, Fout, TM) lane-dense output tile.
    acc_ref : (F, TM) fp32 accumulator.
    """
    k = pl.program_id(2)

    @pl.when(k == 0)
    def _init():
        acc_ref[...] = jnp.zeros_like(acc_ref)

    if x_resident:
        start = pl.multiple_of(k * tk, 128)
        feat = feat_ref[0, :, pl.ds(start, tk)]
    else:
        feat = feat_ref[0]

    adj = adj_ref[0]
    # Position of the reduction index j (adjacency columns) inside the tile.
    adj_j_dim = 0 if adj_kn_layout else 1
    # acc[f, i] += sum_j feat[f, j] * adj[i, j]
    acc_ref[...] += lax.dot_general(
        feat, adj,
        dimension_numbers=(((1,), (adj_j_dim,)), ((), ())),
        preferred_element_type=jnp.float32)

    @pl.when(k == pl.num_programs(2) - 1)
    def _finalize():
        acc = acc_ref[...]
        if apply_w:
            # fp32 epilogue: (Fout, Fin) @ (Fin, TM) -> (Fout, TM).
            # The accumulator is NOT downcast (runs once per output tile).
            out = lax.dot_general(
                w_ref[...], acc,
                dimension_numbers=(((1,), (0,)), ((), ())),
                preferred_element_type=jnp.float32)
        else:
            out = acc
        out_ref[0] = (out + b_ref[...]).astype(out_ref.dtype)


def graph_convolution(x, adj, weight, bias=None, *, block_n=1024,
                      compute_dtype=jnp.bfloat16, symmetric_adj=False,
                      adj_buffers=2):
    """GCN forward.  x: (B, Fin, N), adj: (B, N, N),
    weight: (Fin, Fout) or (1, Fin, Fout), bias: (Fout,1)/(1,Fout,1)/(Fout,)/None.
    Returns (B, Fout, N) == (adj @ (x^T @ W))^T + bias.

    compute_dtype : MXU operand dtype for the N^2 contraction (default bf16);
                    accumulation and the weight/bias epilogue stay fp32.
    symmetric_adj : if True, adj MUST equal adj^T; the adjacency tile is then
                    loaded pre-transposed via the index_map (no operand
                    transpose).  Silently wrong for non-symmetric adj.
    adj_buffers   : pipeline depth for the adjacency stream (>2 only if xprof
                    shows exposed DMA waits at small tiles).
    """
    x = jnp.asarray(x)
    adj = jnp.asarray(adj)
    weight = jnp.asarray(weight, jnp.float32)
    if weight.ndim == 3:
        weight = weight[0]
    B, Fin, N = x.shape
    Fout = weight.shape[-1]
    out_dtype = x.dtype
    cdt = jnp.dtype(compute_dtype)
    csize = cdt.itemsize

    if bias is None:
        bias = jnp.zeros((Fout, 1), jnp.float32)
    bias = jnp.asarray(bias, jnp.float32).reshape(Fout, 1)

    fin_p = _round_up(Fin, 8)
    fout_p = _round_up(Fout, 8)

    # ---- tile choice (VMEM footprint independent of N) -------------------
    if N < 128:
        n_p = N
        tm = tk = N
    else:
        target = max(128, (min(block_n, 4096) // 128) * 128)
        # adj tile is double/triple-buffered; keep it within ~12 MiB of VMEM.
        cap = max(128, (math.isqrt((12 << 20) // (2 * csize)) // 128) * 128)
        target = min(target, cap)
        n_p = _round_up(N, 128)
        tk = _divisor_tile(n_p, target, cap)
        if tk < min(512, target) and target >= 512 and N >= 512:
            # Awkward factorization: pad a little more so a big tile divides.
            n_p = _round_up(N, 512)
            tk = _divisor_tile(n_p, target, cap)
        tm = tk
        if B == 1 and n_p // tm < 2 and n_p >= 256:
            # v7x has two TensorCores: guarantee >= 2 parallel row tiles.
            half = max(128, ((n_p // 2) // 128) * 128)
            tm = _divisor_tile(n_p, half, half)
    grid_m = n_p // tm
    grid_k = n_p // tk

    # ---- association order ------------------------------------------------
    # The N^2 contraction carries min(Fin, Fout) rows.  If Fout < Fin, hoist
    # support^T = W^T @ x into one cheap fp32 XLA pre-pass (once per batch,
    # not once per row tile).
    apply_w = fin_p <= fout_p
    if apply_w:
        feat = x.astype(jnp.float32)
        f_acc = fin_p
    else:
        feat = jnp.einsum("io,bin->bon", weight, x.astype(jnp.float32))
        f_acc = fout_p

    feat_p = _pad(feat.astype(cdt), (B, f_acc, n_p))
    # Pad is fused with the compute-dtype cast (single XLA pass over adj).
    # TODO(synk): mask the ragged edge tile in-kernel to skip the padded adj
    # copy entirely when N is not a multiple of 128.
    # TODO(synk): int8-quantized adjacency path for v5e/v6e (int MXU); not
    # applicable on v7x (bf16/fp8-only MXU).
    adj_p = _pad(adj.astype(cdt), (B, n_p, n_p))
    w_t = _pad(weight.T, (fout_p, fin_p))          # fp32, finalize only
    b_p = _pad(bias, (fout_p, 1))

    # Keep the feature matrix VMEM-resident per batch when it fits: it is
    # then DMA'd once per batch instead of once per row tile.
    x_resident = grid_k > 1 and 2 * f_acc * n_p * csize <= (16 << 20)

    kernel = functools.partial(_gcn_kernel, apply_w=apply_w,
                               adj_kn_layout=symmetric_adj,
                               x_resident=x_resident, tk=tk)

    if x_resident:
        feat_spec = pl.BlockSpec((1, f_acc, n_p), lambda b, m, k: (b, 0, 0))
    else:
        feat_spec = pl.BlockSpec((1, f_acc, tk), lambda b, m, k: (b, 0, k))

    adj_kwargs = {}
    if adj_buffers != 2:
        adj_kwargs["pipeline_mode"] = pl.Buffered(adj_buffers)
    if symmetric_adj:
        # adj == adj^T: load the tile already in (j, i) orientation so the
        # MXU contraction is the standard (non-transposed operand) form.
        adj_spec = pl.BlockSpec((1, tk, tm), lambda b, m, k: (b, k, m),
                                **adj_kwargs)
    else:
        adj_spec = pl.BlockSpec((1, tm, tk), lambda b, m, k: (b, m, k),
                                **adj_kwargs)

    # ---- VMEM budget & advisory cost model --------------------------------
    out_size = jnp.dtype(out_dtype).itemsize
    vmem_est = (
        max(2, adj_buffers) * tm * tk * csize                  # adj tiles
        + 2 * f_acc * (n_p if x_resident else tk) * csize      # features
        + 2 * fout_p * tm * out_size                           # output tile
        + f_acc * tm * 4                                       # accumulator
        + fout_p * fin_p * 4                                   # resident W^T
        + fout_p * 128 * 4                                     # bias (lane pad)
    )
    try:
        phys_vmem = int(pltpu.get_tpu_info().vmem_capacity_bytes)
    except Exception:
        phys_vmem = 64 << 20                                   # v7x worst case
    vmem_limit = int(min(max(32 << 20, vmem_est + (8 << 20)),
                         (3 * phys_vmem) // 4))

    flops = 2 * B * n_p * n_p * f_acc
    if apply_w:
        flops += 2 * B * n_p * fin_p * fout_p
    bytes_accessed = int(
        B * n_p * n_p * csize                                      # adj (once)
        + B * f_acc * n_p * csize * (1 if x_resident else grid_m)  # features
        + fout_p * fin_p * 4 + fout_p * 4                          # W^T, bias
        + B * fout_p * n_p * out_size)                             # output

    out_p = pl.pallas_call(
        kernel,
        out_shape=jax.ShapeDtypeStruct((B, fout_p, n_p), out_dtype),
        grid_spec=pltpu.PrefetchScalarGridSpec(
            num_scalar_prefetch=0,
            grid=(B, grid_m, grid_k),
            in_specs=[
                feat_spec,
                adj_spec,
                pl.BlockSpec((fout_p, fin_p), lambda b, m, k: (0, 0)),
                pl.BlockSpec((fout_p, 1), lambda b, m, k: (0, 0)),
            ],
            out_specs=pl.BlockSpec((1, fout_p, tm), lambda b, m, k: (b, 0, m)),
            scratch_shapes=[pltpu.VMEM((f_acc, tm), jnp.float32)],
        ),
        compiler_params=pltpu.CompilerParams(
            dimension_semantics=("parallel", "parallel", "arbitrary"),
            vmem_limit_bytes=vmem_limit,
        ),
        cost_estimate=pl.CostEstimate(
            flops=int(flops), transcendentals=0,
            bytes_accessed=bytes_accessed),
    )(feat_p, adj_p, w_t, b_p)

    return out_p[:, :Fout, :N]


def init_params(key, in_features, out_features):
    """Deterministic init mirroring GraphConvolution.reset_parameters()."""
    stdv = 1.0 / math.sqrt(out_features)
    kw, kb = jax.random.split(key)
    weight = jax.random.uniform(
        kw, (in_features, out_features), jnp.float32, minval=-stdv, maxval=stdv)
    bias = jax.random.uniform(
        kb, (out_features, 1), jnp.float32, minval=-stdv, maxval=stdv)
    return weight, bias


def _reference(x, adj, weight, bias):
    support = jnp.einsum("bin,io->bno", x, weight)        # (B, N, Fout)
    support = jnp.einsum("bnm,bmo->bno", adj, support)    # (B, N, Fout)
    return jnp.transpose(support, (0, 2, 1)) + bias[None]  # (B, Fout, N)


if __name__ == "__main__":
    key = jax.random.PRNGKey(0)
    keys = jax.random.split(key, 8)

    # ---- Case 1: tiny module-sized shapes, fp32 compute (tight check) ----
    B, Fin, Fout, N = 2, 4, 8, 16
    x = jax.random.normal(keys[0], (B, Fin, N), jnp.float32)     # (B, Fin, N)
    adj = jax.random.normal(keys[1], (B, N, N), jnp.float32)     # (B, N, N)
    weight, bias = init_params(keys[2], Fin, Fout)

    out = jax.block_until_ready(
        graph_convolution(x, adj, weight, bias, compute_dtype=jnp.float32))
    ref = _reference(x, adj, weight, bias)
    assert out.shape == (B, Fout, N)
    assert jnp.allclose(out, ref, atol=1e-4, rtol=1e-5)

    # ---- Case 1b: bias=None -----------------------------------------------
    out_nb = jax.block_until_ready(
        graph_convolution(x, adj, weight, None, compute_dtype=jnp.float32))
    ref_nb = _reference(x, adj, weight, jnp.zeros((Fout, 1), jnp.float32))
    assert jnp.allclose(out_nb, ref_nb, atol=1e-4, rtol=1e-5)

    # ---- Case 2: tiling + padding + K accumulation + resident-x slicing ---
    N2 = 200  # pads to 256; block_n=128 -> grid (B, 2, 2)
    x2 = jax.random.normal(keys[3], (B, Fin, N2), jnp.float32)
    adj2 = jax.random.normal(keys[4], (B, N2, N2), jnp.float32)
    out2 = jax.block_until_ready(
        graph_convolution(x2, adj2, weight, bias, block_n=128,
                          compute_dtype=jnp.float32))
    ref2 = _reference(x2, adj2, weight, bias)
    assert jnp.allclose(out2, ref2, atol=1e-4, rtol=1e-4)

    # ---- Case 3: default bf16 MXU operands, fp32 accumulation/epilogue ----
    out3 = jax.block_until_ready(graph_convolution(x2, adj2, weight, bias))
    assert out3.shape == ref2.shape
    assert jnp.allclose(out3, ref2, atol=0.5, rtol=5e-2)

    # ---- Case 4: fout-first path (Fout < Fin): hoisted support^T pre-pass -
    Fin2, Fout2 = 12, 4
    w2, b2 = init_params(keys[5], Fin2, Fout2)
    x4 = jax.random.normal(keys[6], (B, Fin2, N2), jnp.float32)
    out4 = jax.block_until_ready(
        graph_convolution(x4, adj2, w2, b2, block_n=128,
                          compute_dtype=jnp.float32))
    ref4 = _reference(x4, adj2, w2, b2)
    assert jnp.allclose(out4, ref4, atol=1e-4, rtol=1e-4)

    # ---- Case 5: symmetric-adjacency fast path (transpose-free load) ------
    adj_sym = adj2 + jnp.swapaxes(adj2, 1, 2)
    out5 = jax.block_until_ready(
        graph_convolution(x2, adj_sym, weight, bias, block_n=128,
                          compute_dtype=jnp.float32, symmetric_adj=True))
    ref5 = _reference(x2, adj_sym, weight, bias)
    assert jnp.allclose(out5, ref5, atol=1e-4, rtol=1e-4)

    # ---- Case 6: B == 1 -> row tile split so grid_m >= 2 (v7x megacore) ---
    x6 = jax.random.normal(keys[7], (1, Fin, 256), jnp.float32)
    adj6 = jax.random.normal(keys[2], (1, 256, 256), jnp.float32)
    out6 = jax.block_until_ready(
        graph_convolution(x6, adj6, weight, bias, compute_dtype=jnp.float32))
    ref6 = _reference(x6, adj6, weight, bias)
    assert jnp.allclose(out6, ref6, atol=1e-4, rtol=1e-4)

    print("KERNEL_OK")
</pallas_src>

<mosaic_0001>
module attributes {stable_mosaic.version = 11 : i64} {
  func.func @_gcn_kernel(%arg0: i32, %arg1: i32, %arg2: i32, %arg3: memref<1x8x16xf32, #tpu.memory_space<vmem>>, %arg4: memref<1x16x16xf32, #tpu.memory_space<vmem>>, %arg5: memref<8x8xf32, #tpu.memory_space<vmem>>, %arg6: memref<8x1xf32, #tpu.memory_space<vmem>>, %arg7: memref<1x8x16xf32, #tpu.memory_space<vmem>>, %arg8: memref<8x16xf32, #tpu.memory_space<vmem>>) attributes {dimension_semantics = [#tpu.dimension_semantics<parallel>, #tpu.dimension_semantics<parallel>, #tpu.dimension_semantics<arbitrary>], iteration_bounds = array<i64: 2, 1, 1>, scalar_prefetch = 0 : i64, scratch_operands = 1 : i64, tpu.core_type = #tpu.core_type<tc>, window_params = [{transform_indices = @transform_0, window_bounds = array<i64: 1, 8, 16>}, {transform_indices = @transform_1, window_bounds = array<i64: 1, 16, 16>}, {pipeline_mode = #tpu.pipeline_mode<synchronous>, transform_indices = @transform_2, window_bounds = array<i64: 8, 8>}, {pipeline_mode = #tpu.pipeline_mode<synchronous>, transform_indices = @transform_3, window_bounds = array<i64: 8, 1>}, {transform_indices = @transform_4, window_bounds = array<i64: 1, 8, 16>}]} {
    %c0_i32 = arith.constant 0 : i32
    %0 = arith.cmpi eq, %arg2, %c0_i32 : i32
    %1 = arith.extui %0 : i1 to i32
    %c0_i32_0 = arith.constant 0 : i32
    %2 = arith.cmpi ne, %1, %c0_i32_0 : i32
    scf.if %2 {
      %cst_12 = arith.constant 0.000000e+00 : f32
      %14 = vector.broadcast %cst_12 : f32 to vector<8x16xf32>
      %c0_13 = arith.constant 0 : index
      %c0_14 = arith.constant 0 : index
      %15 = vector.load %arg8[%c0_13, %c0_14] : memref<8x16xf32, #tpu.memory_space<vmem>>, vector<8x16xf32>
      tpu.vector_store %arg8[%c0_13, %c0_14], %14 {strides = array<i32>} : memref<8x16xf32, #tpu.memory_space<vmem>>, vector<8x16xf32>,
    } else {
    }
    %c0 = arith.constant 0 : index
    %c0_1 = arith.constant 0 : index
    %c0_2 = arith.constant 0 : index
    %3 = vector.load %arg3[%c0, %c0_1, %c0_2] : memref<1x8x16xf32, #tpu.memory_space<vmem>>, vector<1x8x16xf32>
    %4 = vector.shape_cast %3 : vector<1x8x16xf32> to vector<8x16xf32>
    %c0_3 = arith.constant 0 : index
    %c0_4 = arith.constant 0 : index
    %c0_5 = arith.constant 0 : index
    %5 = vector.load %arg4[%c0_3, %c0_4, %c0_5] : memref<1x16x16xf32, #tpu.memory_space<vmem>>, vector<1x16x16xf32>
    %6 = vector.shape_cast %5 : vector<1x16x16xf32> to vector<16x16xf32>
    %c0_6 = arith.constant 0 : index
    %c0_7 = arith.constant 0 : index
    %7 = vector.load %arg8[%c0_6, %c0_7] : memref<8x16xf32, #tpu.memory_space<vmem>>, vector<8x16xf32>
    %cst = arith.constant dense<0.000000e+00> : vector<8x16xf32>
    %8 = tpu.matmul %4, %6, %cst {dimension_numbers = #tpu.dot_dimension_numbers<[1], [1], [0], [0], [0, 0, 1, 0], [], []>} : vector<8x16xf32>, vector<16x16xf32>, vector<8x16xf32> -> vector<8x16xf32>
    %9 = arith.addf %7, %8 : vector<8x16xf32>
    %c0_8 = arith.constant 0 : index
    %c0_9 = arith.constant 0 : index
    %10 = vector.load %arg8[%c0_8, %c0_9] : memref<8x16xf32, #tpu.memory_space<vmem>>, vector<8x16xf32>
    tpu.vector_store %arg8[%c0_8, %c0_9], %9 {strides = array<i32>} : memref<8x16xf32, #tpu.memory_space<vmem>>, vector<8x16xf32>,
    %c0_i32_10 = arith.constant 0 : i32
    %11 = arith.cmpi eq, %arg2, %c0_i32_10 : i32
    %12 = arith.extui %11 : i1 to i32
    %c0_i32_11 = arith.constant 0 : i32
    %13 = arith.cmpi ne, %12, %c0_i32_11 : i32
    scf.if %13 {
      %c0_12 = arith.constant 0 : index
      %c0_13 = arith.constant 0 : index
      %14 = vector.load %arg8[%c0_12, %c0_13] : memref<8x16xf32, #tpu.memory_space<vmem>>, vector<8x16xf32>
      %c0_14 = arith.constant 0 : index
      %c0_15 = arith.constant 0 : index
      %15 = vector.load %arg5[%c0_14, %c0_15] : memref<8x8xf32, #tpu.memory_space<vmem>>, vector<8x8xf32>
      %cst_16 = arith.constant dense<0.000000e+00> : vector<8x16xf32>
      %16 = tpu.matmul %15, %14, %cst_16 {dimension_numbers = #tpu.dot_dimension_numbers<[1], [0], [0], [1], [0, 0, 1, 1], [], []>} : vector<8x8xf32>, vector<8x16xf32>, vector<8x16xf32> -> vector<8x16xf32>
      %c0_17 = arith.constant 0 : index
      %c0_18 = arith.constant 0 : index
      %17 = vector.load %arg6[%c0_17, %c0_18] : memref<8x1xf32, #tpu.memory_space<vmem>>, vector<8x1xf32>
      %18 = vector.broadcast %17 : vector<8x1xf32> to vector<8x16xf32>
      %19 = arith.addf %16, %18 : vector<8x16xf32>
      %c0_19 = arith.constant 0 : index
      %c0_20 = arith.constant 0 : index
      %c0_21 = arith.constant 0 : index
      %20 = vector.load %arg7[%c0_19, %c0_20, %c0_21] : memref<1x8x16xf32, #tpu.memory_space<vmem>>, vector<1x8x16xf32>
      %21 = vector.shape_cast %20 : vector<1x8x16xf32> to vector<8x16xf32>
      %22 = vector.shape_cast %19 : vector<8x16xf32> to vector<1x8x16xf32>
      tpu.vector_store %arg7[%c0_19, %c0_20, %c0_21], %22 {strides = array<i32>} : memref<1x8x16xf32, #tpu.memory_space<vmem>>, vector<1x8x16xf32>,
    } else {
    }
    return
  }
  func.func @transform_0(%arg0: i32, %arg1: i32, %arg2: i32) -> (i32, i32, i32) {
    %c0_i32 = arith.constant 0 : i32
    %c0_i32_0 = arith.constant 0 : i32
    return %arg0, %c0_i32, %arg2 : i32, i32, i32
  }
  func.func @transform_1(%arg0: i32, %arg1: i32, %arg2: i32) -> (i32, i32, i32) {
    %c0_i32 = arith.constant 0 : i32
    return %arg0, %arg1, %arg2 : i32, i32, i32
  }
  func.func @transform_2(%arg0: i32, %arg1: i32, %arg2: i32) -> (i32, i32) {
    %c0_i32 = arith.constant 0 : i32
    %c0_i32_0 = arith.constant 0 : i32
    %c0_i32_1 = arith.constant 0 : i32
    return %c0_i32, %c0_i32_0 : i32, i32
  }
  func.func @transform_3(%arg0: i32, %arg1: i32, %arg2: i32) -> (i32, i32) {
    %c0_i32 = arith.constant 0 : i32
    %c0_i32_0 = arith.constant 0 : i32
    %c0_i32_1 = arith.constant 0 : i32
    return %c0_i32, %c0_i32_0 : i32, i32
  }
  func.func @transform_4(%arg0: i32, %arg1: i32, %arg2: i32) -> (i32, i32, i32) {
    %c0_i32 = arith.constant 0 : i32
    %c0_i32_0 = arith.constant 0 : i32
    return %arg0, %c0_i32, %arg1 : i32, i32, i32
  }
}

</mosaic_0001>

<bundles_post_ra>
// kernel: tpu_custom_call.1
= control target key start
LH: loop header
LB: loop body
LE: loop exit
PB: predicated region body
PF: predicated region fallthrough
CT: control target
= control target key end

     0   :  { %9 = vsyncpa [#allocation4], 0  ;;  %s1061_s0 = inlined_call_operand.hbm [shape: f32[2,8,16], index: 0, kind: input, shape index: {}]   ;;  %s1062_s1 = inlined_call_operand.hbm [shape: f32[2,16,16], index: 1, kind: input, shape index: {}]   ;;  %s1063_s2 = inlined_call_operand.vmem [shape: f32[8,8], index: 2, kind: input, shape index: {}]   ;;  %s1064_s3 = inlined_call_operand.vmem [shape: f32[8,1], index: 3, kind: input, shape index: {}]   ;;  %s1065_s4 = inlined_call_operand.hbm [shape: f32[2,8,16], index: 4, kind: output, shape index: {}]  }
   0x1   :  { %11 = vsyncpa [#allocation4 + $0x1], 0 }
   0x2   :  { %12 = vsyncpa [#allocation7], 0 }
   0x3   :  { %14 = vsyncpa [#allocation7 + $0x1], 0 }
   0x4   :  { %15 = vsyncpa [#allocation5], 0 }
   0x5   :  { %17 = vsyncpa [#allocation5 + $0x1], 0  ;;  %s875_s15 = smov 0   ;;  %s877_s16 = smov 0  }
   0x6   :  { %s879_s17 = smov 0   ;;  %s881_s18 = smov 0  }
   0x7   :  { %s883_s19 = smov 0   ;;  %s885_s20 = smov 0  }
   0x8 LB: > { %s588_s21 = sadd.s32 4294967295, %s840_s20   ;;  %s589_s22 = sadd.s32 4294967294, %s840_s20   ;;  %s840_s20 = sphi %s885_s20, %s23_s20   ;;  %s836_s19 = sphi %s883_s19, %s1077_s19   ;;  %s832_s18 = sphi %s881_s18, %s1076_s18   ;;  %s828_s17 = sphi %s879_s17, %s1075_s17   ;;  %s824_s16 = sphi %s877_s16, %s1074_s16   ;;  %s820_s15 = sphi %s875_s15, %s1073_s15  }
   0x9   : > { %s42_s23 = sadd.s32 1, %s836_s19  ;;  %s51_s24 = sadd.s32 1, %s828_s17 }
   0xa   : > { %p44_p0 = scmp.ge.s32.totalorder %s42_s23, 2  ;;  %p58_p1 = scmp.ne.s32.totalorder %s828_s17, %s824_s16 }
   0xb   : > { %p59_p2 = scmp.eq.s32.totalorder %s840_s20, 0  ;;  %p64_p3 = scmp.ne.s32.totalorder %s824_s16, %s820_s15 }
   0xc   : > { %s1079_s23 = smov (%p44_p0, %s42_s23), 0  ;;  %p65_p5 = scmp.eq.s32.totalorder %s588_s21, 0 }
   0xd   : > { %p916_p4 = por %p59_p2, %p58_p1  ;;  %s46_s26 = ssub.s32 %s836_s19, %s1079_s23 }
   0xe   : > { %p162_p6 = scmp.eq.s32.totalorder %s588_s21, 1  ;;  %p49_p7 = scmp.eq.s32.totalorder %s46_s26, 0 }
   0xf   : > { %p922_p8 = por %p65_p5, %p64_p3  ;;  %p168_p10 = scmp.eq.s32.totalorder %s589_s22, 1 }
  0x10   : > { %p926_p9 = por %p162_p6, %p58_p1  ;;  %p644_p13 = scmp.lt.s32.totalorder %s840_s20, 2 }
  0x11   : > { %s931_s29 = scalar_select %p49_p7, %s828_s17, %s51_s24  }
  0x12   : > { %p933_p11 = por %p168_p10, %p64_p3  ;;  %s940_s5 = sand.u32 1, %s828_s17  }
  0x13   : > { %s592_s6 = sshll.u32 %s940_s5, 3  ;;  %s593_s7 = sshll.u32 %s836_s19, 7 }
  0x14   : > { %s204_s10 = scalar_lea.hbm %s1061_s0, %s593_s7  ;;  %s198_s11 = scalar_lea.vmem [#allocation3], %s592_s6 }
  0x15   : > { %s206_s12 = sshll.u32 %s198_s11, 4  ;;  %p949_p0 = pnand %p644_p13, %p916_p4  ;;  %s207_s12 = int_to_ptr.vmem [resolvable:$true] %s206_s12 }
  0x16   : > { %p597_p1 = scmp.ge.s32.totalorder %s840_s20, 1  ;;  %p235_p2 = scmp.lt.s32.totalorder %s840_s20, 3 }
  0x17   : > { %s195_s14 = scalar_lea.sflag [#allocation4], %s940_s5  ;;  %p702_p3 = pneg %p949_p0 }
  0x18   : > { %s713_s21 = scalar_lea.vmem %s207_s12, 128  ;;  %s842_s22 = smov [#allocation3]  }
  0x19   : > { %p714_p5 = scmp.ne.s32.totalorder %s207_s12, %s713_s21  ;;  %s718_s24 = sshll.u32 %s842_s22, 4  ;;  %s719_s24 = int_to_ptr.vmem [resolvable:$false] %s718_s24 }
  0x1a   : > { %s720_s25 = scalar_lea.vmem %s719_s24, 256  ;;  %p721_p4 = scmp.lt.s32.totalorder %s207_s12, %s719_s24 }
  0x1b   : > { %p716_p6 = pnand %p714_p5, %p702_p3  ;;  %p722_p10 = scmp.lt.s32.totalorder %s720_s25, %s713_s21 }
  0x1d   : > { %p717_p7 = pneg %p716_p6  ;;  %p723_p13 = por %p722_p10, %p721_p4 }
  0x1f   : > { %p724_p12 = pnand %p723_p13, %p717_p7 }
  0x21   : > { %727 = shalt.err (!%p724_p12)
}
  0x22   : > { %636 = dma.hbm_to_vmem [thread:$0]  (!%p949_p0), %s204_s10, 128, %s207_s12, %s195_s14  }
  0x23   : > { %p967_p5 = pnand %p597_p1, %p235_p2  ;;  %s594_s6 = sshll.u32 %s940_s5, 4 }
  0x24   : > { %s609_s7 = sshll.u32 %s836_s19, 8  ;;  %s217_s21 = scalar_lea.vmem [#allocation6], %s594_s6 }
  0x25   : > { %s226_s11 = scalar_lea.hbm %s1062_s1, %s609_s7  ;;  %s227_s22 = sshll.u32 %s217_s21, 4  ;;  %s228_s22 = int_to_ptr.vmem [resolvable:$true] %s227_s22 }
  0x26   : > { %s214_s24 = scalar_lea.sflag [#allocation7], %s940_s5  ;;  %s741_s25 = scalar_lea.vmem %s228_s22, 256 }
  0x27   : > { %p742_p12 = scmp.ne.s32.totalorder %s228_s22, %s741_s25  ;;  %s843_s10 = smov [#allocation6]  }
  0x28   : > { %s746_s12 = sshll.u32 %s843_s10, 4  ;;  %s747_s12 = int_to_ptr.vmem [resolvable:$false] %s746_s12 }
  0x29   : > { %p744_p6 = pnand %p742_p12, %p702_p3  ;;  %s748_s14 = scalar_lea.vmem %s747_s12, 512 }
  0x2a   : > { %p749_p1 = scmp.lt.s32.totalorder %s228_s22, %s747_s12  ;;  %p750_p2 = scmp.lt.s32.totalorder %s748_s14, %s741_s25 }
  0x2b   : > { %p745_p7 = pneg %p744_p6 }
  0x2c   : > { %p751_p4 = por %p750_p2, %p749_p1 }
  0x2e   : > { %p752_p10 = pnand %p751_p4, %p745_p7 }
  0x30   : > { %755 = shalt.err (!%p752_p10)
}
  0x31   : > { %s844_s7 = smov 128   ;;  %s845_s6 = smov 8  }
  0x32   : > { %639 = dma.hbm_to_vmem [thread:$0]  (!%p949_p0), %s226_s11, 256, %s228_s22, %s214_s24, %s844_s7, %s844_s7, %s845_s6  }
  0x33   : > { %239 = sbr.rel (%p967_p5) target bundleno = 482 (0x1e2), region = 36  ;;  %s985_s5 = sand.u32 (!%p967_p5), 1, %s824_s16  }
  0x34   : > { %s598_s8 = sshll.u32 (!%p967_p5), %s985_s5, 3  ;;  %s242_s9 = scalar_lea.sflag (!%p967_p5), [#allocation4], %s985_s5 }
  0x35   : > { %s245_s21 = scalar_lea.vmem (!%p967_p5), [#allocation3], %s598_s8 }
  0x38   : > { %807 = dma.done.wait (%p922_p8), %s242_s9, 128  }
  0x39   : > { %809 = vsyncadd (%p922_p8), %s242_s9, 4294967168  ;;  %s599_s13 = sshll.u32 %s985_s5, 4  ;;  %s251_s26 = scalar_lea.sflag [#allocation7], %s985_s5 }
  0x3a   : > { %s254_s11 = scalar_lea.vmem [#allocation6], %s599_s13 }
  0x3b   : > { %811 = dma.done.wait (%p922_p8), %s251_s26, 256  }
  0x3c   : > { %813 = vsyncadd (%p922_p8), %s251_s26, 4294967040  ;;  %vm289_vm0 = vcmask 130048   ;;  %v846_v0 = vmov 0.0   ;;  %vm847_vm1 = vmmov 0   ;;  %v293_v1 = vld [vmem:[%s254_s11 + $0x8] sm:$0xff]  ;;  %v292_v2 = vld [vmem:[%s254_s11] sm:$0xff] }
  0x3d   : > { %615 = vmatprep.subr.mxu0 %v846_v0  ;;  %290 = vst.msk [vmem:[#allocation2] sm:$0xff] %vm289_vm0, %v846_v0  ;;  %619 = vmatprep.mubr.msk.f32.mxu0 %vm847_vm1, %v846_v0  ;;  %v291_v3 = vld [vmem:[%s245_s21] sm:$0xff]  ;;  %v382_v4 = vld [vmem:[%s1064_s3] sm:$0xff]  ;;  %v848_v5 = vmov 0   ;;  %vm388_vm2 = vcmask 64512   ;;  %s606_s10 = sshll.u32 %s832_s18, 7 }
  0x3e   : > { %622 = vmatprep.subr.mxu1 %v846_v0  ;;  %624 = vmatprep.mubr.msk.f32.mxu1 %vm847_vm1, %v846_v0  ;;  %v381_v10 = vld [vmem:[%s1063_s2] sm:$0xff]  ;;  %s283_s12 = scalar_lea.vmem [#allocation8], %s598_s8  ;;  %s1018_s9 = scalar_lea.hbm %s1065_s4, %s606_s10 }
  0x3f   : > { %616 = vmatpush3.xpose.msk.msra.mxu0 %vm289_vm0, %v293_v1  ;;  %699 = vset.pattern.permute.xlu0 %v848_v5  ;;  %s478_s14 = sshll.u32 %s283_s12, 4  ;;  %s464_s21 = scalar_lea.sflag [#allocation5], %s985_s5  ;;  %s479_s14 = int_to_ptr.vmem [resolvable:$true] %s478_s14 }
  0x40   : > { %617 = vmatprep.subr.mxu0 %v846_v0  ;;  %385 = vperm.xlu0 %699, %v382_v4   ;;  %s756_s13 = scalar_lea.vmem %s479_s14, 128  ;;  %s849_s18 = smov [#allocation8]  }
  0x41   : > { %p757_p8 = scmp.ne.s32.totalorder %s479_s14, %s756_s13  ;;  %s760_s8 = sshll.u32 %s849_s18, 4  ;;  %s761_s8 = int_to_ptr.vmem [resolvable:$false] %s760_s8 }
  0x42   : > { %s762_s26 = scalar_lea.vmem %s761_s8, 256  ;;  %p763_p13 = scmp.lt.s32.totalorder %s479_s14, %s761_s8 }
  0x43   : > { %618 = vmatpush3.xpose.msk.msra.mxu0 %vm289_vm0, %v292_v2  ;;  %p758_p0 = pnand %p757_p8, %p926_p9  ;;  %p764_p5 = scmp.lt.s32.totalorder %s762_s26, %s756_s13 }
  0x44   : > { %v294_v6 = vld [vmem:[#allocation2] sm:$0xff] }
  0x45   : > { %p759_p3 = pneg %p758_p0  ;;  %p765_p12 = por %p764_p5, %p763_p13 }
  0x46   : > { %620 = vmatmul.mubr.msk.f32.vlgmr.msra.gmra.mxu0 %vm289_vm0, %v291_v3 }
  0x47   : > { %p766_p6 = pnand %p765_p12, %p759_p3 }
  0xbb   : > { %v386_v12 = vpop.permute.xlu0 %385 }
 0x106   : > { %v371_v7 = vpop.f32.mrf.mxu0 }
 0x107   : > { %v375_v8 = vadd.f32 %v371_v7, %v294_v6 }
 0x108   : > { %v621_v9 = vpop.f32.mrf.mxu0 }
 0x109   : > { %376 = vst.msk [vmem:[#allocation2] sm:$0xff] %vm289_vm0, %v375_v8 }
 0x110   : > { %v380_v11 = vld [vmem:[#allocation2] sm:$0xff] }
 0x111   : > { %623 = vmatpush3.msra.mxu1 %v380_v11 }
 0x112   : > { %625 = vmatmul.mubr.msk.f32.vlgmr.msra.gmra.mxu1 %vm388_vm2, %v381_v10 }
 0x1d2   : > { %v458_v13 = vpop.f32.mrf.mxu1 }
 0x1d3   : > { %v459_v14 = vadd.f32 %v458_v13, %v386_v12 }
 0x1d4   : > { %v626_v15 = vpop.f32.mrf.mxu1 }
 0x1d5   : > { %462 = vst.msk [vmem:[%s283_s12] sm:$0xff] %vm289_vm0, %v459_v14 }
 0x1d6   : > { %769 = shalt.err (!%p766_p6)
}
 0x1d7   : > { %s770_s11 = scalar_lea.hbm %s1018_s9, 128  ;;  %s774_s22 = scalar_lea.hbm %s1065_s4, 256 }
 0x1d8   : > { %p771_p7 = scmp.ne.s32.totalorder %s1018_s9, %s770_s11  ;;  %p775_p4 = scmp.lt.s32.totalorder %s1018_s9, %s1065_s4 }
 0x1d9   : > { %p776_p10 = scmp.lt.s32.totalorder %s774_s22, %s770_s11 }
 0x1da   : > { %p772_p1 = pnand %p771_p7, %p926_p9 }
 0x1db   : > { %p777_p8 = por %p776_p10, %p775_p4 }
 0x1dc   : > { %p773_p2 = pneg %p772_p1 }
 0x1de   : > { %p778_p0 = pnand %p777_p8, %p773_p2 }
 0x1e0   : > { %781 = shalt.err (!%p778_p0)
}
 0x1e1   : > { %631 = dma.vmem_to_hbm [thread:$0]  (%p926_p9), %s479_s14, 128, %s1018_s9, %s464_s21  }
 0x1e2 PF: > { %s490_s10 = sand.u32 1, %s820_s15   ;;  %p1072_p3 = scmp.ge.s32.totalorder %s840_s20, 2 }
 0x1e3   : > { %s491_s12 = scalar_lea.sflag [#allocation5], %s490_s10 }
 0x1e4   : > { %p641_p13 = pnand %p1072_p3, %p933_p11 }
 0x1e6   : > { %p642_p5 = pneg %p641_p13 }
 0x1e8   : > { %815 = dma.done.wait (%p642_p5), %s491_s12, 128  }
 0x1e9   : > { %817 = vsyncadd (%p642_p5), %s491_s12, 4294967168  ;;  %s23_s20 = sadd.s32 1, %s840_s20   ;;  %s1073_s15 = smov %s824_s16 }
 0x1ea   : > { %p20_p12 = scmp.ge.s32.totalorder %s23_s20, 4   ;;  %s1074_s16 = smov %s828_s17 }
 0x1eb   : > { %s1075_s17 = smov %s931_s29  ;;  %s1076_s18 = smov %s836_s19 }
 0x1ec   : > { %s1077_s19 = smov %s1079_s23  ;;  %22 = sbr.rel (!%p20_p12) target bundleno = 8 (0x8), region = 102 }
 0x1f1   :  { %496 = vsyncpa [#allocation4], 1 }
 0x1f2   :  { %498 = vsyncpa [#allocation4 + $0x1], 1 }
 0x1f3   :  { %499 = vsyncpa [#allocation7], 1 }
 0x1f4   :  { %501 = vsyncpa [#allocation7 + $0x1], 1 }
 0x1f5   :  { %502 = vsyncpa [#allocation5], 1 }
 0x1f6   :  { %504 = vsyncpa [#allocation5 + $0x1], 1 }

</bundles_post_ra>
